<compile_context>
chip_gen: v5e
topology: v5e:2x2
jax: 0.10.0
libtpu: 0.0.40
codegen_flags: <defaults>
</compile_context>

<pallas_src>
import functools

import numpy as np

import jax
import jax.numpy as jnp
from jax.experimental import pallas as pl
from jax.experimental.pallas import tpu as pltpu


def _round_up(v, m):
    return (v + m - 1) // m * m


# --------------------------------------------------------------------------
# Stage 1:  XW = X @ W_T  (weight pre-transposed/padded to (F_in_pad, F_pad))
# Output kept in fp32 to avoid double rounding before the A @ XW stage.
# --------------------------------------------------------------------------
def _xw_kernel(x_ref, wt_ref, o_ref, *, compute_dtype):
    x = x_ref[...].astype(compute_dtype)
    wt = wt_ref[...].astype(compute_dtype)
    o_ref[...] = jnp.dot(x, wt, preferred_element_type=jnp.float32)


# --------------------------------------------------------------------------
# Stage 2 (XW VMEM-resident):  OUT[i] = sum_k A[i, k] @ XW[k]
#   * A streamed fp32 from HBM, cast per-tile in-kernel (VPU cast is free
#     under DMA slack on a bandwidth-bound kernel).
#   * Accumulate directly into the fp32 output block (resident across k).
# --------------------------------------------------------------------------
def _agg_kernel_resident(a_ref, xw_ref, o_ref, *, tk, compute_dtype):
    k = pl.program_id(1)

    @pl.when(k == 0)
    def _():
        o_ref[...] = jnp.zeros_like(o_ref)

    off = pl.multiple_of(k * tk, tk)
    a = a_ref[...].astype(compute_dtype)
    xw = xw_ref[pl.ds(off, tk), :].astype(compute_dtype)
    o_ref[...] += jnp.dot(a, xw, preferred_element_type=jnp.float32)


# Stage 2 fallback (XW streamed per k-tile) when XW does not fit in VMEM.
def _agg_kernel_tiled(a_ref, xw_ref, o_ref, *, compute_dtype):
    k = pl.program_id(1)

    @pl.when(k == 0)
    def _():
        o_ref[...] = jnp.zeros_like(o_ref)

    o_ref[...] += jnp.dot(a_ref[...].astype(compute_dtype),
                          xw_ref[...].astype(compute_dtype),
                          preferred_element_type=jnp.float32)


# --------------------------------------------------------------------------
# Wrapper
# --------------------------------------------------------------------------
@functools.partial(jax.jit, static_argnames=("tm", "tk", "compute_dtype"))
def gcn_conv(matrix, x, weight, *, tm=512, tk=512, compute_dtype=jnp.bfloat16):
    """Pallas GCNConv forward:  (matrix @ x) @ weight.T   (bias=False).

    matrix: (N, N) float32
    x:      (N, F_in) float32
    weight: (F_out, F_in) float32  (torch.nn.Linear layout)
    returns (N, F_out) in x.dtype
    """
    n, fin = x.shape
    fout, fin_w = weight.shape
    assert fin_w == fin

    # Lane-dense padded feature dims (multiples of 128).
    f_pad = _round_up(max(fout, 128), 128)
    fin_pad = _round_up(max(fin, 128), 128)

    # ---- tile sizing ---------------------------------------------------------
    rows = _round_up(n, 8)
    tm = min(tm, rows)
    # v7x megacore: make sure the "parallel" row axis has >= 2 tiles when possible.
    if rows > 8 and _round_up(n, tm) // tm < 2:
        tm = max(8, _round_up((n + 1) // 2, 8))
    n_pad_m = _round_up(n, tm)          # padded row dim of A / output

    tk = min(tk, rows)
    n_pad_k = _round_up(n, tk)          # padded reduction dim (cols of A, rows of XW)

    # XW residency decision: full fp32 XW (double-buffered by the pipeline)
    # plus the A/out tiles must stay well inside the 32 MiB scoped VMEM that
    # is safe on every generation (v7x physical is 64 MiB).
    xw_bytes = n_pad_k * f_pad * 4
    xw_resident = xw_bytes <= 12 * 1024 * 1024

    # ---- operand prep --------------------------------------------------------
    # A stays fp32 (no wrapper cast pass); pad only if the tiles don't divide N.
    if (n_pad_m, n_pad_k) == (n, n):
        a_p = matrix
    else:
        a_p = jnp.pad(matrix, ((0, n_pad_m - n), (0, n_pad_k - n)))
    # X is tiny relative to A: pad rows to n_pad_k and features to fin_pad.
    x_p = jnp.pad(x, ((0, n_pad_k - n), (0, fin_pad - fin)))
    # One-time transpose of the (F_out, F_in) Linear weight into a lane-dense RHS.
    wt_p = jnp.pad(weight.T, ((0, fin_pad - fin), (0, f_pad - fout)))

    # ---- Stage 1: XW = X @ W^T  (fp32 result, lane-dense F_pad columns) ------
    xw = pl.pallas_call(
        functools.partial(_xw_kernel, compute_dtype=compute_dtype),
        out_shape=jax.ShapeDtypeStruct((n_pad_k, f_pad), jnp.float32),
        grid_spec=pltpu.PrefetchScalarGridSpec(
            num_scalar_prefetch=0,
            grid=(n_pad_k // tk,),
            in_specs=[
                pl.BlockSpec((tk, fin_pad), lambda i: (i, 0)),
                pl.BlockSpec((fin_pad, f_pad), lambda i: (0, 0)),   # weight resident
            ],
            out_specs=pl.BlockSpec((tk, f_pad), lambda i: (i, 0)),
        ),
        compiler_params=pltpu.CompilerParams(
            dimension_semantics=("parallel",),
            vmem_limit_bytes=32 * 1024 * 1024,
        ),
    )(x_p, wt_p)

    # ---- Stage 2: OUT = A @ XW, reduction axis last, accumulate into o_ref ---
    grid = (n_pad_m // tm, n_pad_k // tk)

    if xw_resident:
        kernel = functools.partial(_agg_kernel_resident, tk=tk,
                                   compute_dtype=compute_dtype)
        xw_spec = pl.BlockSpec((n_pad_k, f_pad), lambda i, k: (0, 0))
        xw_stream_bytes = xw_bytes                      # DMA'd once
        xw_vmem_bytes = 2 * xw_bytes                    # pipeline allocates 2 bufs
    else:
        kernel = functools.partial(_agg_kernel_tiled, compute_dtype=compute_dtype)
        xw_spec = pl.BlockSpec((tk, f_pad), lambda i, k: (k, 0))
        xw_stream_bytes = grid[0] * n_pad_k * f_pad * 4  # re-read per row tile
        xw_vmem_bytes = 2 * tk * f_pad * 4

    vmem_needed = (2 * tm * tk * 4          # A tiles (fp32, double-buffered)
                   + 2 * tm * f_pad * 4     # output tiles (fp32)
                   + xw_vmem_bytes)
    # At least the safe 32 MiB default, capped below v7x's 64 MiB physical VMEM.
    vmem_limit = int(min(max(vmem_needed + (4 << 20), 32 << 20), 56 << 20))

    cost = pl.CostEstimate(
        flops=2 * n_pad_m * n_pad_k * f_pad,
        transcendentals=0,
        bytes_accessed=(n_pad_m * n_pad_k * 4        # fp32 A streamed once
                        + xw_stream_bytes
                        + n_pad_m * f_pad * 4),
    )

    out_p = pl.pallas_call(
        kernel,
        out_shape=jax.ShapeDtypeStruct((n_pad_m, f_pad), jnp.float32),
        grid_spec=pltpu.PrefetchScalarGridSpec(
            num_scalar_prefetch=0,
            grid=grid,
            in_specs=[
                pl.BlockSpec((tm, tk), lambda i, k: (i, k)),
                xw_spec,
            ],
            out_specs=pl.BlockSpec((tm, f_pad), lambda i, k: (i, 0)),
        ),
        compiler_params=pltpu.CompilerParams(
            dimension_semantics=("parallel", "arbitrary"),
            vmem_limit_bytes=vmem_limit,
        ),
        cost_estimate=cost,
    )(a_p, xw)

    return out_p[:n, :fout].astype(x.dtype)


if __name__ == "__main__":
    key = jax.random.PRNGKey(0)

    # ---- small shapes consistent with the module -----------------------------
    num_nodes = 16
    num_node_in_features = 32
    num_node_out_features = 8

    k_mat, k_x, k_w, k2_mat, k2_x, k2_w = jax.random.split(key, 6)

    matrix = jax.random.uniform(k_mat, (num_nodes, num_nodes), dtype=jnp.float32)
    x = jax.random.normal(k_x, (num_nodes, num_node_in_features), dtype=jnp.float32)
    weight = jax.random.normal(
        k_w, (num_node_out_features, num_node_in_features), dtype=jnp.float32) * 0.1

    ref = (matrix @ x) @ weight.T

    # Default path: bf16 MXU inputs, fp32 accumulation -> loose tolerance.
    out = jax.block_until_ready(gcn_conv(matrix, x, weight))
    assert out.shape == (num_nodes, num_node_out_features)
    assert jnp.allclose(out, ref, atol=1e-1, rtol=5e-2), float(jnp.max(jnp.abs(out - ref)))

    # fp32 path for a tight numerical check.
    out_f32 = jax.block_until_ready(
        gcn_conv(matrix, x, weight, compute_dtype=jnp.float32))
    assert jnp.allclose(out_f32, ref, atol=1e-4, rtol=1e-4)

    # ---- medium shape: exercises multi-tile grid, k>0 accumulation and the
    # resident-XW dynamic slicing path (fp32 compute, float64 numpy reference).
    n2, fin2, fout2 = 384, 64, 16
    matrix2 = jax.random.uniform(k2_mat, (n2, n2), dtype=jnp.float32)
    x2 = jax.random.normal(k2_x, (n2, fin2), dtype=jnp.float32)
    weight2 = jax.random.normal(k2_w, (fout2, fin2), dtype=jnp.float32) * 0.1

    ref2 = (np.asarray(matrix2, np.float64) @ np.asarray(x2, np.float64)) \
        @ np.asarray(weight2, np.float64).T
    out2 = jax.block_until_ready(
        gcn_conv(matrix2, x2, weight2, tm=128, tk=128, compute_dtype=jnp.float32))
    assert out2.shape == (n2, fout2)
    assert jnp.allclose(out2, ref2.astype(np.float32), atol=1e-2, rtol=1e-3), \
        float(jnp.max(jnp.abs(out2 - ref2.astype(np.float32))))

    print("KERNEL_OK")
</pallas_src>

<mosaic_0001>
module attributes {stable_mosaic.version = 11 : i64} {
  func.func @_xw_kernel(%arg0: i32, %arg1: memref<16x128xf32, #tpu.memory_space<vmem>>, %arg2: memref<128x128xf32, #tpu.memory_space<vmem>>, %arg3: memref<16x128xf32, #tpu.memory_space<vmem>>) attributes {dimension_semantics = [#tpu.dimension_semantics<parallel>], iteration_bounds = array<i64: 1>, scalar_prefetch = 0 : i64, scratch_operands = 0 : i64, tpu.core_type = #tpu.core_type<tc>, window_params = [{transform_indices = @transform_0, window_bounds = array<i64: 16, 128>}, {pipeline_mode = #tpu.pipeline_mode<synchronous>, transform_indices = @transform_1, window_bounds = array<i64: 128, 128>}, {transform_indices = @transform_2, window_bounds = array<i64: 16, 128>}]} {
    %c0 = arith.constant 0 : index
    %c0_0 = arith.constant 0 : index
    %0 = vector.load %arg1[%c0, %c0_0] : memref<16x128xf32, #tpu.memory_space<vmem>>, vector<16x128xf32>
    %1 = arith.truncf %0 : vector<16x128xf32> to vector<16x128xbf16>
    %c0_1 = arith.constant 0 : index
    %c0_2 = arith.constant 0 : index
    %2 = vector.load %arg2[%c0_1, %c0_2] : memref<128x128xf32, #tpu.memory_space<vmem>>, vector<128x128xf32>
    %3 = arith.truncf %2 : vector<128x128xf32> to vector<128x128xbf16>
    %cst = arith.constant dense<0.000000e+00> : vector<16x128xf32>
    %4 = tpu.matmul %1, %3, %cst {dimension_numbers = #tpu.dot_dimension_numbers<[1], [0], [0], [1], [0, 0, 1, 1], [], []>} : vector<16x128xbf16>, vector<128x128xbf16>, vector<16x128xf32> -> vector<16x128xf32>
    %c0_3 = arith.constant 0 : index
    %c0_4 = arith.constant 0 : index
    %5 = vector.load %arg3[%c0_3, %c0_4] : memref<16x128xf32, #tpu.memory_space<vmem>>, vector<16x128xf32>
    tpu.vector_store %arg3[%c0_3, %c0_4], %4 {strides = array<i32>} : memref<16x128xf32, #tpu.memory_space<vmem>>, vector<16x128xf32>,
    return
  }
  func.func @transform_0(%arg0: i32) -> (i32, i32) {
    %c0_i32 = arith.constant 0 : i32
    %c0_i32_0 = arith.constant 0 : i32
    return %arg0, %c0_i32 : i32, i32
  }
  func.func @transform_1(%arg0: i32) -> (i32, i32) {
    %c0_i32 = arith.constant 0 : i32
    %c0_i32_0 = arith.constant 0 : i32
    %c0_i32_1 = arith.constant 0 : i32
    return %c0_i32, %c0_i32_0 : i32, i32
  }
  func.func @transform_2(%arg0: i32) -> (i32, i32) {
    %c0_i32 = arith.constant 0 : i32
    %c0_i32_0 = arith.constant 0 : i32
    return %arg0, %c0_i32 : i32, i32
  }
}

module attributes {stable_mosaic.version = 11 : i64} {
  func.func @_agg_kernel_resident(%arg0: i32, %arg1: i32, %arg2: memref<8x16xf32, #tpu.memory_space<vmem>>, %arg3: memref<16x128xf32, #tpu.memory_space<vmem>>, %arg4: memref<8x128xf32, #tpu.memory_space<vmem>>) attributes {dimension_semantics = [#tpu.dimension_semantics<parallel>, #tpu.dimension_semantics<arbitrary>], iteration_bounds = array<i64: 2, 1>, scalar_prefetch = 0 : i64, scratch_operands = 0 : i64, tpu.core_type = #tpu.core_type<tc>, window_params = [{transform_indices = @transform_0, window_bounds = array<i64: 8, 16>}, {pipeline_mode = #tpu.pipeline_mode<synchronous>, transform_indices = @transform_1, window_bounds = array<i64: 16, 128>}, {transform_indices = @transform_2, window_bounds = array<i64: 8, 128>}]} {
    %c0_i32 = arith.constant 0 : i32
    %0 = arith.cmpi eq, %arg1, %c0_i32 : i32
    %1 = arith.extui %0 : i1 to i32
    %c0_i32_0 = arith.constant 0 : i32
    %2 = arith.cmpi ne, %1, %c0_i32_0 : i32
    scf.if %2 {
      %cst_7 = arith.constant 0.000000e+00 : f32
      %14 = vector.broadcast %cst_7 : f32 to vector<8x128xf32>
      %c0_8 = arith.constant 0 : index
      %c0_9 = arith.constant 0 : index
      %15 = vector.load %arg4[%c0_8, %c0_9] : memref<8x128xf32, #tpu.memory_space<vmem>>, vector<8x128xf32>
      tpu.vector_store %arg4[%c0_8, %c0_9], %14 {strides = array<i32>} : memref<8x128xf32, #tpu.memory_space<vmem>>, vector<8x128xf32>,
    } else {
    }
    %c16_i32 = arith.constant 16 : i32
    %3 = arith.muli %arg1, %c16_i32 : i32
    %4 = tpu.assume_multiple %3, 16 : i32
    %c0 = arith.constant 0 : index
    %c0_1 = arith.constant 0 : index
    %5 = vector.load %arg2[%c0, %c0_1] : memref<8x16xf32, #tpu.memory_space<vmem>>, vector<8x16xf32>
    %6 = arith.truncf %5 : vector<8x16xf32> to vector<8x16xbf16>
    %7 = arith.index_cast %4 : i32 to index
    %c0_2 = arith.constant 0 : index
    %8 = vector.load %arg3[%7, %c0_2] : memref<16x128xf32, #tpu.memory_space<vmem>>, vector<16x128xf32>
    %9 = arith.truncf %8 : vector<16x128xf32> to vector<16x128xbf16>
    %c0_3 = arith.constant 0 : index
    %c0_4 = arith.constant 0 : index
    %10 = vector.load %arg4[%c0_3, %c0_4] : memref<8x128xf32, #tpu.memory_space<vmem>>, vector<8x128xf32>
    %cst = arith.constant dense<0.000000e+00> : vector<8x128xf32>
    %11 = tpu.matmul %6, %9, %cst {dimension_numbers = #tpu.dot_dimension_numbers<[1], [0], [0], [1], [0, 0, 1, 1], [], []>} : vector<8x16xbf16>, vector<16x128xbf16>, vector<8x128xf32> -> vector<8x128xf32>
    %12 = arith.addf %10, %11 : vector<8x128xf32>
    %c0_5 = arith.constant 0 : index
    %c0_6 = arith.constant 0 : index
    %13 = vector.load %arg4[%c0_5, %c0_6] : memref<8x128xf32, #tpu.memory_space<vmem>>, vector<8x128xf32>
    tpu.vector_store %arg4[%c0_5, %c0_6], %12 {strides = array<i32>} : memref<8x128xf32, #tpu.memory_space<vmem>>, vector<8x128xf32>,
    return
  }
  func.func @transform_0(%arg0: i32, %arg1: i32) -> (i32, i32) {
    %c0_i32 = arith.constant 0 : i32
    return %arg0, %arg1 : i32, i32
  }
  func.func @transform_1(%arg0: i32, %arg1: i32) -> (i32, i32) {
    %c0_i32 = arith.constant 0 : i32
    %c0_i32_0 = arith.constant 0 : i32
    %c0_i32_1 = arith.constant 0 : i32
    return %c0_i32, %c0_i32_0 : i32, i32
  }
  func.func @transform_2(%arg0: i32, %arg1: i32) -> (i32, i32) {
    %c0_i32 = arith.constant 0 : i32
    %c0_i32_0 = arith.constant 0 : i32
    return %arg0, %c0_i32 : i32, i32
  }
}

</mosaic_0001>

<bundles_post_ra>
// kernel: gcn_conv.2
= control target key start
LH: loop header
LB: loop body
LE: loop exit
PB: predicated region body
PF: predicated region fallthrough
CT: control target
= control target key end

     0   :  { %s133_s1 = inlined_call_operand.vmem [shape: f32[128,128], index: 1, kind: input, shape index: {}]   ;;  %s134_s0 = inlined_call_operand.vmem [shape: f32[16,128], index: 0, kind: input, shape index: {}]   ;;  %s135_s2 = inlined_call_operand.vmem [shape: f32[16,128], index: 2, kind: output, shape index: {}]  }
   0x1   :  { %v28_v0 = vld [vmem:[%s133_s1 + $0x70] sm:$0xff]  ;;  %v29_v1 = vld [vmem:[%s133_s1 + $0x78] sm:$0xff]  ;;  %v26_v2 = vld [vmem:[%s133_s1 + $0x60] sm:$0xff] }
   0x2   :  { %v37_v3 = vpack.c.bf16 %v29_v1, %v28_v0  ;;  %v27_v4 = vld [vmem:[%s133_s1 + $0x68] sm:$0xff]  ;;  %v24_v6 = vld [vmem:[%s133_s1 + $0x50] sm:$0xff]  ;;  %v25_v7 = vld [vmem:[%s133_s1 + $0x58] sm:$0xff] }
   0x3   :  { %v36_v5 = vpack.c.bf16 %v27_v4, %v26_v2  ;;  %v35_v8 = vpack.c.bf16 %v25_v7, %v24_v6  ;;  %v22_v9 = vld [vmem:[%s133_s1 + $0x40] sm:$0xff]  ;;  %v23_v10 = vld [vmem:[%s133_s1 + $0x48] sm:$0xff]  ;;  %v20_v12 = vld [vmem:[%s133_s1 + $0x30] sm:$0xff] }
   0x4   :  { %38 = vmatpush.bf16.msra.mxu0 %v37_v3  ;;  %v34_v11 = vpack.c.bf16 %v23_v10, %v22_v9  ;;  %v21_v13 = vld [vmem:[%s133_s1 + $0x38] sm:$0xff]  ;;  %v18_v15 = vld [vmem:[%s133_s1 + $0x20] sm:$0xff]  ;;  %v19_v16 = vld [vmem:[%s133_s1 + $0x28] sm:$0xff] }
   0x5   :  { %v33_v14 = vpack.c.bf16 %v21_v13, %v20_v12  ;;  %v32_v17 = vpack.c.bf16 %v19_v16, %v18_v15  ;;  %v16_v18 = vld [vmem:[%s133_s1 + $0x10] sm:$0xff]  ;;  %v17_v19 = vld [vmem:[%s133_s1 + $0x18] sm:$0xff]  ;;  %v14_v21 = vld [vmem:[%s133_s1] sm:$0xff] }
   0x6   :  { %v31_v20 = vpack.c.bf16 %v17_v19, %v16_v18  ;;  %v15_v22 = vld [vmem:[%s133_s1 + $0x8] sm:$0xff]  ;;  %v11_v24 = vld [vmem:[%s134_s0] sm:$0xff] }
   0x7   :  { %v30_v23 = vpack.c.bf16 %v15_v22, %v14_v21  ;;  %v12_v25 = vld [vmem:[%s134_s0 + $0x8] sm:$0xff] }
   0x8   :  { %39 = vmatpush.bf16.msra.mxu0 %v36_v5  ;;  %v13_v26 = vpack.c.bf16 %v12_v25, %v11_v24 }
   0xc   :  { %40 = vmatpush.bf16.msra.mxu0 %v35_v8 }
  0x10   :  { %41 = vmatpush.bf16.msra.mxu0 %v34_v11 }
  0x14   :  { %42 = vmatpush.bf16.msra.mxu0 %v33_v14 }
  0x18   :  { %43 = vmatpush.bf16.msra.mxu0 %v32_v17 }
  0x1c   :  { %44 = vmatpush.bf16.msra.mxu0 %v31_v20 }
  0x20   :  { %45 = vmatpush.bf16.msra.mxu0 %v30_v23 }
  0x23   :  { %46 = vmatmul.bf16.vlgmr.msra.gmra.mxu0 %v13_v26 }
  0xa0   :  { %v47_v27 = vpop.f32.mrf.mxu0 }
  0xa1   :  { %52 = vst [vmem:[%s135_s2] sm:$0xff] %v47_v27 }
  0xa8   :  { %v49_v28 = vpop.f32.mrf.mxu0 }
  0xa9   :  { %53 = vst [vmem:[%s135_s2 + $0x8] sm:$0xff] %v49_v28 }

// kernel: gcn_conv.3
= control target key start
LH: loop header
LB: loop body
LE: loop exit
PB: predicated region body
PF: predicated region fallthrough
CT: control target
= control target key end

     0   :  { %s335_s9 = smov 0   ;;  %s337_s10 = smov 0   ;;  %s367_s0 = inlined_call_operand.vmem [shape: f32[16,16], index: 0, kind: input, shape index: {}]   ;;  %s368_s1 = inlined_call_operand.vmem [shape: f32[16,128], index: 1, kind: input, shape index: {}]   ;;  %s369_s2 = inlined_call_operand.vmem [shape: f32[16,128], index: 2, kind: output, shape index: {}]  }
   0x1   :  { %s339_s11 = smov 0  }
   0x2 LB: > { %s24_s12 = sadd.s32 1, %s314_s10  ;;  %p265_p0 = scmp.ge.s32.totalorder %s318_s11, 1  ;;  %s318_s11 = sphi %s339_s11, %s12_s11   ;;  %s314_s10 = sphi %s337_s10, %s371_s10   ;;  %s310_s9 = sphi %s335_s9, %s370_s9  }
   0x3   : > { %p26_p1 = scmp.ge.s32.totalorder %s24_s12, 2  ;;  %p128_p2 = scmp.lt.s32.totalorder %s318_s11, 3 }
   0x5   : > { %s373_s12 = smov (%p26_p1, %s24_s12), 0  ;;  %p129_p3 = pnand %p265_p0, %p128_p2 }
   0x6   : > { %p151_p4 = scmp.lt.s32.totalorder (!%p129_p3), %s310_s9, 1 }
   0x7   : > { %132 = sbr.rel (%p129_p3) target bundleno = 152 (0x98), region = 28 }
   0xc   : > { %v172_v0 = vld [vmem:[%s368_s1] sm:$0xff]  ;;  %v173_v1 = vld [vmem:[%s368_s1 + $0x8] sm:$0xff]  ;;  %s375_s9 = smov (!%p151_p4, %s310_s9), 1  ;;  %vm176_vm0 = vcmask 130048  }
   0xd   : > { %v174_v2 = vpack.c.bf16 %v173_v1, %v172_v0  ;;  %s266_s17 = sshll.u32 %s375_s9, 3 }
   0xe   : > { %s157_s20 = scalar_lea.vmem %s367_s0, %s266_s17  ;;  %s161_s23 = scalar_lea.vmem %s369_s2, %s266_s17 }
   0xf   : > { %187 = vmatpush.bf16.msra.mxu0 %v174_v2  ;;  %v169_v3 = vld [vmem:[%s157_s20] sm:$0xff] }
  0x10   : > { %v170_v4 = vpack.c.bf16 %v169_v3, %v169_v3 }
  0x12   : > { %268 = vmatmul.msk.bf16.vlgmr.msra.gmra.mxu0 %vm176_vm0, %v170_v4 }
  0x8f   : > { %v189_v5 = vpop.f32.mrf.mxu0 }
  0x90   : > { %194 = vst [vmem:[%s161_s23] sm:$0xff] %v189_v5 }
  0x97   : > { %v191_v6 = vpop.f32.mrf.mxu0 }
  0x98 PF: > { %s12_s11 = sadd.s32 1, %s318_s11   ;;  %s370_s9 = smov %s314_s10 }
  0x99   : > { %p9_p5 = scmp.ge.s32.totalorder %s12_s11, 4   ;;  %s371_s10 = smov %s373_s12 }
  0x9b   :  { %11 = sbr.rel (!%p9_p5) target bundleno = 2 (0x2), region = 63 }

</bundles_post_ra>
